<compile_context>
chip_gen: v7x
topology: tpu7x:2x2x1
jax: 0.10.0
libtpu: 0.0.40
codegen_flags: <defaults>
</compile_context>

<pallas_src>
import functools

import jax
import jax.numpy as jnp
from jax.experimental import pallas as pl
from jax.experimental.pallas import tpu as pltpu

_LANE = 128
_SUBLANE = 8
_NEG_BIG = -1e30  # bias for padded logit columns; exp(_NEG_BIG - m) underflows to 0


def _round_up(x, m):
    return ((x + m - 1) // m) * m


def _choose_batch_tile(B):
    """Pick a batch tile: small batches get a tight tile, large batches get
    big (but <=1024) tiles with >=2 grid steps for v7x megacore sharding."""
    tile = min(1024, _round_up(B, _SUBLANE))
    if B > 2 * _LANE:
        tile = min(tile, max(_LANE, _round_up(pl.cdiv(B, 2), _LANE)))
    return tile


def _mlp_policy_kernel(n_hidden_layers, compute_dtype, *refs):
    """refs = (obs_ref, w0, b0, ..., w_last, b_last, logp_ref, lse_ref)."""
    obs_ref = refs[0]
    n_linear = n_hidden_layers + 1
    param_refs = refs[1:1 + 2 * n_linear]
    logp_ref, lse_ref = refs[1 + 2 * n_linear:]

    h = obs_ref[...].astype(compute_dtype)
    # Hidden layers: Linear -> Tanh (MXU matmul in compute_dtype, f32 accumulate;
    # tanh stays f32 — v5e has no bf16 VPU/EUP path and the EUP slot is idle).
    for layer in range(n_hidden_layers):
        w = param_refs[2 * layer][...]            # [in, out], compute_dtype
        b = param_refs[2 * layer + 1][...]        # [1, out], f32
        pre = jnp.dot(h, w, preferred_element_type=jnp.float32) + b
        h = jnp.tanh(pre).astype(compute_dtype)

    # Output layer: Linear (identity output activation); lane-padded width.
    w_out = param_refs[2 * n_hidden_layers][...]
    b_out = param_refs[2 * n_hidden_layers + 1][...]
    logits = jnp.dot(h, w_out, preferred_element_type=jnp.float32) + b_out

    # Categorical(logits): log_probs = logits - logsumexp(logits).
    # Padded columns carry -1e30 bias -> exp() contributes exactly 0.
    m = jnp.max(logits, axis=-1, keepdims=True)
    lse = m + jnp.log(jnp.sum(jnp.exp(logits - m), axis=-1, keepdims=True))
    logp_ref[...] = logits - lse        # only output wide store (f32, 128 lanes)
    lse_ref[...] = lse                  # 1 lane/row; logits recoverable outside


def prep_mlp_params(params, n_hidden_layers, compute_dtype=jnp.bfloat16):
    """One-time param prep (cache this on the policy object):
    weights cast to compute_dtype for the MXU, biases stay f32, and the output
    layer is padded to a 128-lane width (zero weight cols, -1e30 bias cols)."""
    n_linear = n_hidden_layers + 1
    ac_dim = params[-1].shape[-1]
    ac_pad = _round_up(ac_dim, _LANE)
    prepped = []
    for layer in range(n_linear):
        W = params[2 * layer]
        b = params[2 * layer + 1].reshape(1, -1).astype(jnp.float32)
        if layer == n_linear - 1 and ac_pad != ac_dim:
            W = jnp.pad(W, ((0, 0), (0, ac_pad - ac_dim)))
            b = jnp.pad(b, ((0, 0), (0, ac_pad - ac_dim)),
                        constant_values=_NEG_BIG)
        prepped.append(W.astype(compute_dtype))
        prepped.append(b)
    return prepped, ac_dim, ac_pad


def mlp_policy_forward_padded(obs, prepped, *, n_hidden_layers, ac_pad,
                              batch_tile=None, compute_dtype=jnp.bfloat16):
    """Production entry point: returns the padded kernel outputs directly
    (no post-kernel slice copies).

    obs:     [B, ob_dim] float32
    prepped: output of prep_mlp_params
    Returns:
      log_probs_pad [padded_B, ac_pad] f32 (padded cols ~= -1e30, padded rows garbage)
      lse_pad       [padded_B, 1]      f32 (logits = log_probs + lse)
    """
    B, ob_dim = obs.shape
    if batch_tile is None:
        batch_tile = _choose_batch_tile(B)
    num_tiles = pl.cdiv(B, batch_tile)
    padded_B = num_tiles * batch_tile  # outputs padded; no host-side pad of obs

    obs_spec = pl.BlockSpec((batch_tile, ob_dim), lambda i: (i, 0))
    # Constant block index => params stay VMEM-resident across grid steps.
    param_specs = [pl.BlockSpec(p.shape, lambda i: (0, 0)) for p in prepped]
    logp_spec = pl.BlockSpec((batch_tile, ac_pad), lambda i: (i, 0))
    lse_spec = pl.BlockSpec((batch_tile, 1), lambda i: (i, 0))

    kernel = functools.partial(_mlp_policy_kernel, n_hidden_layers, compute_dtype)

    log_probs, lse = pl.pallas_call(
        kernel,
        out_shape=(
            jax.ShapeDtypeStruct((padded_B, ac_pad), jnp.float32),
            jax.ShapeDtypeStruct((padded_B, 1), jnp.float32),
        ),
        grid_spec=pltpu.PrefetchScalarGridSpec(
            num_scalar_prefetch=0,
            grid=(num_tiles,),
            in_specs=[obs_spec] + param_specs,
            out_specs=(logp_spec, lse_spec),
        ),
        compiler_params=pltpu.CompilerParams(
            dimension_semantics=("parallel",),
        ),
    )(obs, *prepped)
    return log_probs, lse


def mlp_policy_forward(obs, params, *, n_hidden_layers, batch_tile=None,
                       compute_dtype=jnp.bfloat16):
    """Module-compatible wrapper (validation / drop-in API): returns
    (logits [B, ac_dim], log_probs [B, ac_dim]) in f32.  Production consumers
    should use mlp_policy_forward_padded and read the padded layout directly."""
    B = obs.shape[0]
    prepped, ac_dim, ac_pad = prep_mlp_params(params, n_hidden_layers, compute_dtype)
    logp_pad, lse_pad = mlp_policy_forward_padded(
        obs, prepped, n_hidden_layers=n_hidden_layers, ac_pad=ac_pad,
        batch_tile=batch_tile, compute_dtype=compute_dtype)
    log_probs = logp_pad[:B, :ac_dim]
    logits = log_probs + lse_pad[:B]
    return logits, log_probs


def init_mlp_params(key, ob_dim, ac_dim, n_hidden_layers, hidden_size):
    """Deterministic init mimicking torch.nn.Linear default (U[-1/sqrt(fan_in), 1/sqrt(fan_in)])."""
    dims = [ob_dim] + [hidden_size] * n_hidden_layers + [ac_dim]
    params = []
    for fan_in, fan_out in zip(dims[:-1], dims[1:]):
        key, kw, kb = jax.random.split(key, 3)
        bound = 1.0 / jnp.sqrt(float(fan_in))
        W = jax.random.uniform(kw, (fan_in, fan_out), jnp.float32, -bound, bound)
        b = jax.random.uniform(kb, (1, fan_out), jnp.float32, -bound, bound)
        params.extend([W, b])
    return params


def reference_forward(obs, params, n_hidden_layers):
    h = obs
    for layer in range(n_hidden_layers):
        h = jnp.tanh(h @ params[2 * layer] + params[2 * layer + 1])
    logits = h @ params[2 * n_hidden_layers] + params[2 * n_hidden_layers + 1]
    log_probs = jax.nn.log_softmax(logits, axis=-1)
    return logits, log_probs


if __name__ == "__main__":
    # Small shapes consistent with MLPPolicy(ob_dim, ac_dim, n_hidden_layers, hidden_size, lr)
    ob_dim = 16
    ac_dim = 8
    n_hidden_layers = 2
    hidden_size = 32
    batch = 2

    key = jax.random.PRNGKey(0)
    key, k_obs = jax.random.split(key)
    obs = jax.random.normal(k_obs, (batch, ob_dim), jnp.float32)
    params = init_mlp_params(key, ob_dim, ac_dim, n_hidden_layers, hidden_size)

    # f32 compute path: exact numerics vs the pure-JAX reference (also exercises
    # the small-batch tile clamp: tile=8, grid=1).
    logits32, logp32 = mlp_policy_forward(
        obs, params, n_hidden_layers=n_hidden_layers, compute_dtype=jnp.float32)
    jax.block_until_ready((logits32, logp32))
    ref_logits, ref_logp = reference_forward(obs, params, n_hidden_layers)
    assert jnp.allclose(logits32, ref_logits, atol=1e-5, rtol=1e-5)
    assert jnp.allclose(logp32, ref_logp, atol=1e-5, rtol=1e-5)

    # Default bf16 MXU path on a bigger batch: exercises the production padded
    # entry point, a multi-step grid (>=2 steps for v7x megacore) and a partial
    # final obs tile (no host-side padding of obs).
    key, k_big = jax.random.split(key)
    big_B = 1000
    big_obs = jax.random.normal(k_big, (big_B, ob_dim), jnp.float32)
    prepped, ad, ac_pad = prep_mlp_params(params, n_hidden_layers, jnp.bfloat16)
    logp_pad, lse_pad = mlp_policy_forward_padded(
        big_obs, prepped, n_hidden_layers=n_hidden_layers, ac_pad=ac_pad)
    jax.block_until_ready((logp_pad, lse_pad))
    # Validation-only slices (production consumers read the padded layout).
    logp_bf = logp_pad[:big_B, :ad]
    logits_bf = logp_bf + lse_pad[:big_B]
    ref_logits_b, ref_logp_b = reference_forward(big_obs, params, n_hidden_layers)
    assert jnp.allclose(logits_bf, ref_logits_b, atol=3e-2, rtol=3e-2)
    assert jnp.allclose(logp_bf, ref_logp_b, atol=3e-2, rtol=3e-2)
    # Padded columns must be effectively -inf so sampling/argmax over the padded
    # layout never selects them.
    assert bool(jnp.all(logp_pad[:big_B, ad:] < -1e20))

    # TODO(synk): get_action's masked torch.multinomial sampling and update()'s Adam
    # step are host-side / training logic and are intentionally not part of the
    # forward kernel.

    print("KERNEL_OK")
</pallas_src>

<mosaic_0001>
module attributes {stable_mosaic.version = 11 : i64} {
  func.func @_mlp_policy_kernel(%arg0: i32, %arg1: memref<8x16xf32, #tpu.memory_space<vmem>>, %arg2: memref<16x32xf32, #tpu.memory_space<vmem>>, %arg3: memref<1x32xf32, #tpu.memory_space<vmem>>, %arg4: memref<32x32xf32, #tpu.memory_space<vmem>>, %arg5: memref<1x32xf32, #tpu.memory_space<vmem>>, %arg6: memref<32x128xf32, #tpu.memory_space<vmem>>, %arg7: memref<1x128xf32, #tpu.memory_space<vmem>>, %arg8: memref<8x128xf32, #tpu.memory_space<vmem>>, %arg9: memref<8x1xf32, #tpu.memory_space<vmem>>) attributes {dimension_semantics = [#tpu.dimension_semantics<parallel>], iteration_bounds = array<i64: 1>, scalar_prefetch = 0 : i64, scratch_operands = 0 : i64, tpu.core_type = #tpu.core_type<tc>, window_params = [{transform_indices = @transform_0, window_bounds = array<i64: 8, 16>}, {pipeline_mode = #tpu.pipeline_mode<synchronous>, transform_indices = @transform_1, window_bounds = array<i64: 16, 32>}, {pipeline_mode = #tpu.pipeline_mode<synchronous>, transform_indices = @transform_2, window_bounds = array<i64: 1, 32>}, {pipeline_mode = #tpu.pipeline_mode<synchronous>, transform_indices = @transform_3, window_bounds = array<i64: 32, 32>}, {pipeline_mode = #tpu.pipeline_mode<synchronous>, transform_indices = @transform_4, window_bounds = array<i64: 1, 32>}, {pipeline_mode = #tpu.pipeline_mode<synchronous>, transform_indices = @transform_5, window_bounds = array<i64: 32, 128>}, {pipeline_mode = #tpu.pipeline_mode<synchronous>, transform_indices = @transform_6, window_bounds = array<i64: 1, 128>}, {transform_indices = @transform_7, window_bounds = array<i64: 8, 128>}, {transform_indices = @transform_8, window_bounds = array<i64: 8, 1>}]} {
    %c0 = arith.constant 0 : index
    %c0_0 = arith.constant 0 : index
    %0 = vector.load %arg1[%c0, %c0_0] : memref<8x16xf32, #tpu.memory_space<vmem>>, vector<8x16xf32>
    %c0_1 = arith.constant 0 : index
    %c0_2 = arith.constant 0 : index
    %1 = vector.load %arg2[%c0_1, %c0_2] : memref<16x32xf32, #tpu.memory_space<vmem>>, vector<16x32xf32>
    %c0_3 = arith.constant 0 : index
    %c0_4 = arith.constant 0 : index
    %2 = vector.load %arg3[%c0_3, %c0_4] : memref<1x32xf32, #tpu.memory_space<vmem>>, vector<1x32xf32>
    %cst = arith.constant dense<0.000000e+00> : vector<8x32xf32>
    %3 = tpu.matmul %0, %1, %cst {dimension_numbers = #tpu.dot_dimension_numbers<[1], [0], [0], [1], [0, 0, 1, 1], [], []>} : vector<8x16xf32>, vector<16x32xf32>, vector<8x32xf32> -> vector<8x32xf32>
    %4 = vector.broadcast %2 : vector<1x32xf32> to vector<8x32xf32>
    %5 = arith.addf %3, %4 : vector<8x32xf32>
    %6 = math.tanh %5 : vector<8x32xf32>
    %c0_5 = arith.constant 0 : index
    %c0_6 = arith.constant 0 : index
    %7 = vector.load %arg4[%c0_5, %c0_6] : memref<32x32xf32, #tpu.memory_space<vmem>>, vector<32x32xf32>
    %c0_7 = arith.constant 0 : index
    %c0_8 = arith.constant 0 : index
    %8 = vector.load %arg5[%c0_7, %c0_8] : memref<1x32xf32, #tpu.memory_space<vmem>>, vector<1x32xf32>
    %cst_9 = arith.constant dense<0.000000e+00> : vector<8x32xf32>
    %9 = tpu.matmul %6, %7, %cst_9 {dimension_numbers = #tpu.dot_dimension_numbers<[1], [0], [0], [1], [0, 0, 1, 1], [], []>} : vector<8x32xf32>, vector<32x32xf32>, vector<8x32xf32> -> vector<8x32xf32>
    %10 = vector.broadcast %8 : vector<1x32xf32> to vector<8x32xf32>
    %11 = arith.addf %9, %10 : vector<8x32xf32>
    %12 = math.tanh %11 : vector<8x32xf32>
    %c0_10 = arith.constant 0 : index
    %c0_11 = arith.constant 0 : index
    %13 = vector.load %arg6[%c0_10, %c0_11] : memref<32x128xf32, #tpu.memory_space<vmem>>, vector<32x128xf32>
    %c0_12 = arith.constant 0 : index
    %c0_13 = arith.constant 0 : index
    %14 = vector.load %arg7[%c0_12, %c0_13] : memref<1x128xf32, #tpu.memory_space<vmem>>, vector<1x128xf32>
    %cst_14 = arith.constant dense<0.000000e+00> : vector<8x128xf32>
    %15 = tpu.matmul %12, %13, %cst_14 {dimension_numbers = #tpu.dot_dimension_numbers<[1], [0], [0], [1], [0, 0, 1, 1], [], []>} : vector<8x32xf32>, vector<32x128xf32>, vector<8x128xf32> -> vector<8x128xf32>
    %16 = vector.broadcast %14 : vector<1x128xf32> to vector<8x128xf32>
    %17 = arith.addf %15, %16 : vector<8x128xf32>
    %cst_15 = arith.constant dense<0xFF800000> : vector<8xf32>
    %18 = vector.multi_reduction <maximumf>, %17, %cst_15 [1] : vector<8x128xf32> to vector<8xf32>
    %19 = vector.shape_cast %18 : vector<8xf32> to vector<8x1xf32>
    %20 = vector.broadcast %19 : vector<8x1xf32> to vector<8x128xf32>
    %21 = arith.subf %17, %20 : vector<8x128xf32>
    %22 = math.exp %21 : vector<8x128xf32>
    %cst_16 = arith.constant dense<0.000000e+00> : vector<8xf32>
    %23 = vector.multi_reduction <add>, %22, %cst_16 [1] : vector<8x128xf32> to vector<8xf32>
    %24 = vector.shape_cast %23 : vector<8xf32> to vector<8x1xf32>
    %25 = math.log %24 : vector<8x1xf32>
    %26 = arith.addf %19, %25 : vector<8x1xf32>
    %27 = vector.broadcast %26 : vector<8x1xf32> to vector<8x128xf32>
    %28 = arith.subf %17, %27 : vector<8x128xf32>
    %c0_17 = arith.constant 0 : index
    %c0_18 = arith.constant 0 : index
    %29 = vector.load %arg8[%c0_17, %c0_18] : memref<8x128xf32, #tpu.memory_space<vmem>>, vector<8x128xf32>
    tpu.vector_store %arg8[%c0_17, %c0_18], %28 {strides = array<i32>} : memref<8x128xf32, #tpu.memory_space<vmem>>, vector<8x128xf32>,
    %c0_19 = arith.constant 0 : index
    %c0_20 = arith.constant 0 : index
    %30 = vector.load %arg9[%c0_19, %c0_20] : memref<8x1xf32, #tpu.memory_space<vmem>>, vector<8x1xf32>
    tpu.vector_store %arg9[%c0_19, %c0_20], %26 {strides = array<i32>} : memref<8x1xf32, #tpu.memory_space<vmem>>, vector<8x1xf32>,
    return
  }
  func.func @transform_0(%arg0: i32) -> (i32, i32) {
    %c0_i32 = arith.constant 0 : i32
    %c0_i32_0 = arith.constant 0 : i32
    return %arg0, %c0_i32 : i32, i32
  }
  func.func @transform_1(%arg0: i32) -> (i32, i32) {
    %c0_i32 = arith.constant 0 : i32
    %c0_i32_0 = arith.constant 0 : i32
    %c0_i32_1 = arith.constant 0 : i32
    return %c0_i32, %c0_i32_0 : i32, i32
  }
  func.func @transform_2(%arg0: i32) -> (i32, i32) {
    %c0_i32 = arith.constant 0 : i32
    %c0_i32_0 = arith.constant 0 : i32
    %c0_i32_1 = arith.constant 0 : i32
    return %c0_i32, %c0_i32_0 : i32, i32
  }
  func.func @transform_3(%arg0: i32) -> (i32, i32) {
    %c0_i32 = arith.constant 0 : i32
    %c0_i32_0 = arith.constant 0 : i32
    %c0_i32_1 = arith.constant 0 : i32
    return %c0_i32, %c0_i32_0 : i32, i32
  }
  func.func @transform_4(%arg0: i32) -> (i32, i32) {
    %c0_i32 = arith.constant 0 : i32
    %c0_i32_0 = arith.constant 0 : i32
    %c0_i32_1 = arith.constant 0 : i32
    return %c0_i32, %c0_i32_0 : i32, i32
  }
  func.func @transform_5(%arg0: i32) -> (i32, i32) {
    %c0_i32 = arith.constant 0 : i32
    %c0_i32_0 = arith.constant 0 : i32
    %c0_i32_1 = arith.constant 0 : i32
    return %c0_i32, %c0_i32_0 : i32, i32
  }
  func.func @transform_6(%arg0: i32) -> (i32, i32) {
    %c0_i32 = arith.constant 0 : i32
    %c0_i32_0 = arith.constant 0 : i32
    %c0_i32_1 = arith.constant 0 : i32
    return %c0_i32, %c0_i32_0 : i32, i32
  }
  func.func @transform_7(%arg0: i32) -> (i32, i32) {
    %c0_i32 = arith.constant 0 : i32
    %c0_i32_0 = arith.constant 0 : i32
    return %arg0, %c0_i32 : i32, i32
  }
  func.func @transform_8(%arg0: i32) -> (i32, i32) {
    %c0_i32 = arith.constant 0 : i32
    %c0_i32_0 = arith.constant 0 : i32
    return %arg0, %c0_i32 : i32, i32
  }
}

</mosaic_0001>

<bundles_post_ra>
// kernel: tpu_custom_call.1
= control target key start
LH: loop header
LB: loop body
LE: loop exit
PB: predicated region body
PF: predicated region fallthrough
CT: control target
= control target key end

     0   :  { %14 = vsyncpa [#allocation3], 0  ;;  %s722_s0 = inlined_call_operand.hbm [shape: f32[2,16], index: 0, kind: input, shape index: {}]   ;;  %s723_s1 = inlined_call_operand.hbm [shape: f32[16,32], index: 1, kind: input, shape index: {}]   ;;  %s724_s2 = inlined_call_operand.vmem [shape: f32[1,32], index: 2, kind: input, shape index: {}]   ;;  %s725_s3 = inlined_call_operand.hbm [shape: f32[32,32], index: 3, kind: input, shape index: {}]   ;;  %s726_s4 = inlined_call_operand.vmem [shape: f32[1,32], index: 4, kind: input, shape index: {}]   ;;  %s727_s5 = inlined_call_operand.hbm [shape: f32[32,128], index: 5, kind: input, shape index: {}]   ;;  %s728_s6 = inlined_call_operand.vmem [shape: f32[1,128], index: 6, kind: input, shape index: {}]   ;;  %s729_s7 = inlined_call_operand.hbm [shape: f32[8,128], index: 7, kind: output, shape index: {0}]   ;;  %s730_s8 = inlined_call_operand.vmem [shape: f32[8,1], index: 8, kind: output, shape index: {1}]  }
   0x1   :  { %15 = vsyncpa [#allocation6], 0 }
   0x2   :  { %16 = vsyncpa [#allocation9], 0 }
   0x3   :  { %17 = vsyncpa [#allocation4], 0 }
   0x4   :  { %22 = vsyncadd [#allocation3], 96  ;;  %s575_s27 = smov [#allocation5]   ;;  %s457_s9 = scalar_lea.hbm %s723_s1, 256 }
   0x5   :  { %s35_s28 = sshll.u32 %s575_s27, 4  ;;  %p458_p0 = scmp.ne.s32.totalorder %s723_s1, %s457_s9  ;;  %s36_s28 = int_to_ptr.vmem [resolvable:$true] %s35_s28 }
   0x6   :  { %p461_p1 = scmp.lt.u32.totalorder %s457_s9, %s723_s1 }
   0x8   :  { %p463_p2 = pnand %p461_p1, %p458_p0 }
   0xa   :  { %466 = shalt.err (!%p463_p2)
}
   0xb   :  { %s467_s14 = scalar_lea.vmem %s36_s28, 256  ;;  %p472_p4 = scmp.lt.s32.totalorder %s36_s28, %s36_s28 }
   0xc   :  { %p468_p3 = scmp.ne.s32.totalorder %s36_s28, %s467_s14  ;;  %p473_p5 = scmp.lt.s32.totalorder %s467_s14, %s467_s14 }
   0xe   :  { %p474_p6 = por %p473_p5, %p472_p4 }
  0x10   :  { %p475_p7 = pnand %p474_p6, %p468_p3 }
  0x12   :  { %478 = shalt.err (!%p475_p7)
}
  0x13   :  { %s576_s15 = smov 128   ;;  %s577_s16 = smov 8  }
  0x14   :  { %41 = dma.hbm_to_vmem [thread:$0]  %s723_s1, 256, %s36_s28, [#allocation6], %s576_s15, %s576_s15, %s577_s16  }
  0x15   :  { %s578_s19 = smov [#allocation2]   ;;  %s479_s23 = scalar_lea.hbm %s722_s0, 32 }
  0x16   :  { %s23_s20 = sshll.u32 %s578_s19, 4  ;;  %p480_p8 = scmp.ne.s32.totalorder %s722_s0, %s479_s23  ;;  %s24_s20 = int_to_ptr.vmem [resolvable:$true] %s23_s20 }
  0x17   :  { %p483_p9 = scmp.lt.u32.totalorder %s479_s23, %s722_s0 }
  0x19   :  { %p485_p10 = pnand %p483_p9, %p480_p8 }
  0x1b   :  { %488 = shalt.err (!%p485_p10)
}
  0x1c   :  { %s489_s29 = scalar_lea.vmem %s24_s20, 32  ;;  %s493_s1 = scalar_lea.vmem %s24_s20, 128 }
  0x1d   :  { %p490_p11 = scmp.ne.s32.totalorder %s24_s20, %s489_s29  ;;  %p494_p12 = scmp.lt.s32.totalorder %s24_s20, %s24_s20 }
  0x1e   :  { %p495_p13 = scmp.lt.s32.totalorder %s493_s1, %s489_s29 }
  0x20   :  { %p496_p0 = por %p495_p13, %p494_p12 }
  0x22   :  { %p497_p1 = pnand %p496_p0, %p490_p11 }
  0x24   :  { %500 = shalt.err (!%p497_p1)
}
  0x25   :  { %s579_s28 = smov 32   ;;  %s580_s30 = smov 2  }
  0x26   :  { %29 = dma.hbm_to_vmem [thread:$0]  %s722_s0, 32, %s24_s20, [#allocation3], %s579_s28, %s579_s28, %s580_s30  }
  0x27   :  { %s581_s11 = smov [#allocation7]   ;;  %s582_s13 = smov [#allocation8]  }
  0x28   :  { %s49_s12 = sshll.u32 %s581_s11, 4  ;;  %s63_s14 = sshll.u32 %s582_s13, 4  ;;  %s50_s12 = int_to_ptr.vmem [resolvable:$true] %s49_s12  ;;  %s659_s14 = int_to_ptr.vmem [resolvable:$true] %s63_s14 }
  0x29   :  { %s501_s19 = scalar_lea.hbm %s725_s3, 512 }
  0x2a   :  { %p502_p2 = scmp.ne.s32.totalorder %s725_s3, %s501_s19  ;;  %p505_p3 = scmp.lt.u32.totalorder %s501_s19, %s725_s3 }
  0x2c   :  { %p507_p4 = pnand %p505_p3, %p502_p2 }
  0x2e   :  { %510 = shalt.err (!%p507_p4)
}
  0x2f   :  { %s511_s0 = scalar_lea.vmem %s50_s12, 512  ;;  %p516_p6 = scmp.lt.s32.totalorder %s50_s12, %s50_s12 }
  0x30   :  { %p512_p5 = scmp.ne.s32.totalorder %s50_s12, %s511_s0  ;;  %p517_p7 = scmp.lt.s32.totalorder %s511_s0, %s511_s0 }
  0x32   :  { %p518_p8 = por %p517_p7, %p516_p6 }
  0x34   :  { %p519_p9 = pnand %p518_p8, %p512_p5 }
  0x36   :  { %522 = shalt.err (!%p519_p9)
}
  0x37   :  { %55 = dma.hbm_to_vmem [thread:$0]  %s725_s3, 512, %s50_s12, [#allocation6], %s576_s15, %s576_s15, %s577_s16  }
  0x38   :  { %s523_s29 = scalar_lea.hbm %s727_s5, 512 }
  0x39   :  { %p524_p10 = scmp.ne.s32.totalorder %s727_s5, %s523_s29  ;;  %p527_p11 = scmp.lt.u32.totalorder %s523_s29, %s727_s5 }
  0x3b   :  { %p529_p12 = pnand %p527_p11, %p524_p10 }
  0x3d   :  { %532 = shalt.err (!%p529_p12)
}
  0x3e   :  { %s533_s10 = scalar_lea.vmem %s659_s14, 512  ;;  %p538_p0 = scmp.lt.s32.totalorder %s659_s14, %s659_s14 }
  0x3f   :  { %p534_p13 = scmp.ne.s32.totalorder %s659_s14, %s533_s10  ;;  %p539_p1 = scmp.lt.s32.totalorder %s533_s10, %s533_s10 }
  0x41   :  { %p540_p2 = por %p539_p1, %p538_p0 }
  0x43   :  { %p541_p3 = pnand %p540_p2, %p534_p13 }
  0x45   :  { %544 = shalt.err (!%p541_p3)
}
  0x46   :  { %69 = dma.hbm_to_vmem [thread:$0]  %s727_s5, 512, %s659_s14, [#allocation9], %s576_s15, %s576_s15, %s577_s16  }
  0x47   :  { %567 = dma.done.wait [#allocation3], 128  }
  0x48   :  { %568 = vsyncadd [#allocation3], 4294967168 }
  0x49   :  { %569 = dma.done.wait [#allocation6], 768  }
  0x4a   :  { %570 = vsyncadd [#allocation6], 4294966528 }
  0x4b   :  { %571 = dma.done.wait [#allocation9], 512  }
  0x4c   :  { %572 = vsyncadd [#allocation9], 4294966784  ;;  %v583_v0 = vmov 0.0|0.0   ;;  %vm584_vm0 = vmmov 0   ;;  %v585_v1 = vmov 0.0   ;;  %v85_v2 = vld [vmem:[#allocation5] sm:$0xff] }
  0x4d   :  { %422 = vmatprep.subr.bf16.mxu0 %v583_v0  ;;  %397 = vmatprep.mubr.msk.f32.mxu0 %vm584_vm0, %v585_v1  ;;  %v86_v3 = vld [vmem:[#allocation5 + $0x8] sm:$0xff]  ;;  %v84_v5 = vld [vmem:[#allocation2] sm:$0xff]  ;;  %vm94_vm1 = vcmask 130048   ;;  %v169_v6 = vld [vmem:[#allocation7] sm:$0xff]  ;;  %vm180_vm2 = vcmask 261120   ;;  %vm351_vm3 = vcmask 7168  }
  0x4e   :  { %425 = vmatprep.subr.bf16.mxu1 %v583_v0  ;;  %408 = vmatprep.mubr.msk.f32.mxu1 %vm584_vm0, %v585_v1  ;;  %v423_v4 = vpack.c.bf16 %v86_v3, %v85_v2  ;;  %v170_v7 = vld [vmem:[#allocation7 + $0x8] sm:$0xff]  ;;  %v171_v8 = vld [vmem:[#allocation7 + $0x10] sm:$0xff]  ;;  %v172_v10 = vld [vmem:[#allocation7 + $0x18] sm:$0xff] }
  0x4f   :  { %v426_v9 = vpack.c.bf16 %v170_v7, %v169_v6  ;;  %v429_v11 = vpack.c.bf16 %v172_v10, %v171_v8  ;;  %v374_v12 = vld [vmem:[%s724_s2] ss:$0 sm:$0xff]  ;;  %v255_v17 = vld [vmem:[#allocation8] sm:$0xff]  ;;  %v257_v19 = vld [vmem:[#allocation8 + $0x10] sm:$0xff] }
  0x50   :  { %424 = vmatpush3.bf16.msra.mxu0 %v423_v4  ;;  %v256_v18 = vld [vmem:[#allocation8 + $0x8] sm:$0xff]  ;;  %v258_v21 = vld [vmem:[#allocation8 + $0x18] sm:$0xff] }
  0x51   :  { %431 = vmatprep.subr.bf16.mxu0 %v583_v0  ;;  %427 = vmatpush3.bf16.msra.mxu1 %v426_v9  ;;  %v432_v20 = vpack.c.bf16 %v256_v18, %v255_v17  ;;  %v435_v22 = vpack.c.bf16 %v258_v21, %v257_v19  ;;  %v376_v23 = vld [vmem:[%s726_s4] ss:$0 sm:$0xff]  ;;  %s586_s4 = smov [#allocation10]  }
  0x52   :  { %428 = vmatprep.subr.bf16.mxu1 %v583_v0  ;;  %v378_v28 = vld [vmem:[%s728_s6] ss:$0 sm:$0xff]  ;;  %s359_s14 = sshll.u32 %s586_s4, 4  ;;  %s360_s14 = int_to_ptr.vmem [resolvable:$true] %s359_s14 }
  0x53   :  { %398 = vmatmul.mubr.msk.f32.vlgmr.msra.gmra.mrb[0].mxu0 %vm94_vm1, %v84_v5  ;;  %s545_s18 = scalar_lea.vmem %s360_s14, 128  ;;  %p550_p5 = scmp.lt.s32.totalorder %s360_s14, %s360_s14 }
  0x54   :  { %419 = vmatprep.mubr.msk.f32.mxu0 %vm584_vm0, %v585_v1  ;;  %433 = vmatpush3.bf16.msra.mxu0 %v432_v20  ;;  %p546_p4 = scmp.ne.s32.totalorder %s360_s14, %s545_s18  ;;  %p551_p6 = scmp.lt.s32.totalorder %s545_s18, %s545_s18 }
  0x55   :  { %430 = vmatpush3.bf16.msra.mxu1 %v429_v11  ;;  %434 = vmatprep.subr.bf16.mxu0 %v583_v0 }
  0x56   :  { %p552_p7 = por %p551_p6, %p550_p5 }
  0x58   :  { %436 = vmatpush3.bf16.msra.mxu0 %v435_v22  ;;  %p553_p8 = pnand %p552_p7, %p546_p4 }
 0x126   :  { %v164_v13 = vpop.f32.mrb[0].mxu0 }
 0x127   :  { %v165_v14 = vadd.f32 %v374_v12, %v164_v13  ;;  %v399_v15 = vpop.f32.mrb[1].mxu0 }
 0x129   :  { %449 = vtanh.f32 %v165_v14 }
 0x133   :  { %v450_v16 = vpop.eup %449 }
 0x134   :  { %409 = vmatmul.mubr.msk.f32.vlgmr.msra.gmra.mrb[0].mxu1 %vm180_vm2, %v450_v16 }
 0x207   :  { %v250_v24 = vpop.f32.mrb[0].mxu1 }
 0x208   :  { %v251_v25 = vadd.f32 %v376_v23, %v250_v24  ;;  %v410_v26 = vpop.f32.mrb[1].mxu1 }
 0x20a   :  { %451 = vtanh.f32 %v251_v25 }
 0x214   :  { %v452_v27 = vpop.eup %451 }
 0x215   :  { %420 = vmatmul.mubr.msk.f32.vlgmr.msra.gmra.mrb[2].mxu0 %vm180_vm2, %v452_v27 }
 0x2e8   :  { %v335_v29 = vpop.f32.mrb[2].mxu0 }
 0x2e9   :  { %v336_v30 = vadd.f32 %v378_v28, %v335_v29  ;;  %v421_v31 = vpop.f32.mrb[3].mxu0 }
 0x2eb   :  { %339 = vmax.xlane.f32.xlu0 %v336_v30 }
 0x378   :  { %v340_v32 = vpop.xlane.xlu0 %339 }
 0x379   :  { %v341_v33 = vsub.f32 %v336_v30, %v340_v32 }
 0x37b   :  { %v342_v34 = vmul.f32 1.442695, %v341_v33 }
 0x37d   :  { %453 = vpow2.f32 %v342_v34 }
 0x387   :  { %v454_v35 = vpop.eup %453 }
 0x388   :  { %344 = vadd.xlane.f32.xlu0 %v454_v35 }
 0x415   :  { %v345_v36 = vpop.xlane.xlu0 %344 }
 0x416   :  { %455 = vlog2.f32 %v345_v36 }
 0x420   :  { %v456_v37 = vpop.eup %455 }
 0x421   :  { %v347_v38 = vmul.f32 0.6931472, %v456_v37 }
 0x423   :  { %v348_v39 = vadd.f32 %v347_v38, %v340_v32 }
 0x425   :  { %352 = vst.msk [vmem:[%s730_s8] sm:$0xff] %vm351_vm3, %v348_v39  ;;  %v349_v40 = vsub.f32 %v336_v30, %v348_v39 }
 0x427   :  { %350 = vst [vmem:[#allocation10] sm:$0xff] %v349_v40 }
 0x428   :  { %556 = shalt.err (!%p553_p8)
}
 0x429   :  { %s557_s22 = scalar_lea.hbm %s729_s7, 128 }
 0x42a   :  { %p558_p9 = scmp.ne.s32.totalorder %s729_s7, %s557_s22  ;;  %p561_p10 = scmp.lt.u32.totalorder %s557_s22, %s729_s7 }
 0x42c   :  { %p563_p11 = pnand %p561_p10, %p558_p9 }
 0x42e   :  { %566 = shalt.err (!%p563_p11)
}
 0x42f   :  { %362 = dma.vmem_to_hbm [thread:$0]  %s360_s14, 128, %s729_s7, [#allocation4]  }
 0x430   :  { %573 = dma.done.wait [#allocation4], 128  }
 0x431   :  { %574 = vsyncadd [#allocation4], 4294967168 }
 0x432   :  { %370 = vsyncpa [#allocation3], 1 }
 0x433   :  { %371 = vsyncpa [#allocation6], 1 }
 0x434   :  { %372 = vsyncpa [#allocation9], 1 }
 0x435   :  { %373 = vsyncpa [#allocation4], 1 }

</bundles_post_ra>
